<compile_context>
chip_gen: v7x
topology: tpu7x:2x2x1
jax: 0.10.0
libtpu: 0.0.40
codegen_flags: <defaults>
</compile_context>

<pallas_src>
import jax
import jax.numpy as jnp
from jax.experimental import pallas as pl
from jax.experimental.pallas import tpu as pltpu


def _operator_kernel(x_ref,       # (1, Cin, TM)   pixel tile, channel-major
                     w_em_ref,    # (nf, Cin)      fused encoder+mid weight (transposed)
                     b_em_ref,    # (nf, 1)        fused bias (includes `val`)
                     w_dec_ref,   # (Cout, nf)     decoder weight (transposed)
                     b_dec_ref,   # (Cout, 1)
                     o_ref):      # (1, Cout, TM)
    x = x_ref[0]                                                  # (Cin, TM) f32

    # fused encoder + val + mid_conv  (single small matmul, bias broadcast over lanes)
    h = jnp.dot(w_em_ref[...], x,
                preferred_element_type=jnp.float32) + b_em_ref[...]   # (nf, TM)

    # LeakyReLU(negative_slope=0.01)
    h = jnp.where(h >= 0, h, 0.01 * h)

    # decoder
    y = jnp.dot(w_dec_ref[...], h,
                preferred_element_type=jnp.float32) + b_dec_ref[...]  # (Cout, TM)

    o_ref[0] = y.astype(o_ref.dtype)


def _round_up(x, m):
    return ((x + m - 1) // m) * m


def operator_forward(x_nchw, val, params, *, tile_m=4096):
    """x_nchw: (N, Cin, H, W) f32; val: scalar f32; params: dict of weights.

    tile_m = pixels per grid step (clamped to a multiple of 128)."""
    N, Cin, H, W = x_nchw.shape
    nf = params["w_mid"].shape[0]
    Cout = params["w_dec"].shape[1]
    HW = H * W

    # NCHW -> (N, C, H*W): pure reshape, no data movement.
    x_mat = x_nchw.reshape(N, Cin, HW)

    # Fold encoder + val + mid into one affine map (cheap XLA ops, done once).
    w_em = (params["w_enc"] @ params["w_mid"]).T                       # (nf, Cin)
    b_em = ((params["b_enc"] + val) @ params["w_mid"]
            + params["b_mid"]).reshape(nf, 1)                          # (nf, 1)
    w_dec = params["w_dec"].T                                          # (Cout, nf)
    b_dec = params["b_dec"].reshape(Cout, 1)                           # (Cout, 1)

    # Pixel-tile size: multiple of 128, no larger than the (padded) row length.
    tm = max(128, min(_round_up(tile_m, 128), _round_up(HW, 128)))
    num_tiles = pl.cdiv(HW, tm)
    # Keep >= 2 grid steps when possible so both TensorCores (v7x) get work.
    if N * num_tiles < 2 and HW > 128:
        tm = _round_up((HW + 1) // 2, 128)
        num_tiles = pl.cdiv(HW, tm)

    grid = (N, num_tiles)

    const = lambda r, c: pl.BlockSpec((r, c), lambda n, j: (0, 0))

    out_mat = pl.pallas_call(
        _operator_kernel,
        out_shape=jax.ShapeDtypeStruct((N, Cout, HW), jnp.float32),
        grid_spec=pltpu.PrefetchScalarGridSpec(
            num_scalar_prefetch=0,
            grid=grid,
            in_specs=[
                pl.BlockSpec((1, Cin, tm), lambda n, j: (n, 0, j)),   # x tile
                const(nf, Cin),                                       # w_em
                const(nf, 1),                                         # b_em
                const(Cout, nf),                                      # w_dec
                const(Cout, 1),                                       # b_dec
            ],
            out_specs=pl.BlockSpec((1, Cout, tm), lambda n, j: (n, 0, j)),
        ),
        compiler_params=pltpu.CompilerParams(
            dimension_semantics=("parallel", "parallel")),
    )(x_mat, w_em, b_em, w_dec, b_dec)

    # (N, Cout, H*W) -> NCHW: pure reshape.
    return out_mat.reshape(N, Cout, H, W)


def init_params(key, in_channels=3, out_channels=3, base_nf=64):
    ks = jax.random.split(key, 6)
    # weights stored as (C_in, C_out) so reference math is x @ W
    return {
        "w_enc": jax.random.normal(ks[0], (in_channels, base_nf), jnp.float32) * 0.1,
        "b_enc": jax.random.normal(ks[1], (base_nf,), jnp.float32) * 0.1,
        "w_mid": jax.random.normal(ks[2], (base_nf, base_nf), jnp.float32) * 0.1,
        "b_mid": jax.random.normal(ks[3], (base_nf,), jnp.float32) * 0.1,
        "w_dec": jax.random.normal(ks[4], (base_nf, out_channels), jnp.float32) * 0.1,
        "b_dec": jax.random.normal(ks[5], (out_channels,), jnp.float32) * 0.1,
    }


def reference_forward(x_nchw, val, params):
    """Pure-JAX reference mirroring the PyTorch module (NCHW, 1x1 convs, unfused)."""
    x = jnp.transpose(x_nchw, (0, 2, 3, 1))                  # NHWC
    x_code = x @ params["w_enc"] + params["b_enc"]
    y_code = x_code + val
    y_code = y_code @ params["w_mid"] + params["b_mid"]
    y_code = jnp.where(y_code >= 0, y_code, 0.01 * y_code)   # LeakyReLU(0.01)
    y = y_code @ params["w_dec"] + params["b_dec"]
    return jnp.transpose(y, (0, 3, 1, 2))                    # back to NCHW


if __name__ == "__main__":
    key = jax.random.PRNGKey(0)
    k_x, k_p = jax.random.split(key)

    N, Cin, H, W = 2, 3, 16, 16
    x = jax.random.normal(k_x, (N, Cin, H, W), jnp.float32)
    val = jnp.float32(0.5)

    params = init_params(k_p, in_channels=Cin, out_channels=3, base_nf=64)

    out = operator_forward(x, val, params)
    out = jax.block_until_ready(out)

    ref = reference_forward(x, val, params)
    assert out.shape == (N, 3, H, W)
    assert jnp.allclose(out, ref, atol=1e-4, rtol=1e-4)

    print("KERNEL_OK")
</pallas_src>

<mosaic_0001>
module attributes {stable_mosaic.version = 11 : i64} {
  func.func @_operator_kernel(%arg0: i32, %arg1: i32, %arg2: memref<1x3x256xf32, #tpu.memory_space<vmem>>, %arg3: memref<64x3xf32, #tpu.memory_space<vmem>>, %arg4: memref<64x1xf32, #tpu.memory_space<vmem>>, %arg5: memref<3x64xf32, #tpu.memory_space<vmem>>, %arg6: memref<3x1xf32, #tpu.memory_space<vmem>>, %arg7: memref<1x3x256xf32, #tpu.memory_space<vmem>>) attributes {dimension_semantics = [#tpu.dimension_semantics<parallel>, #tpu.dimension_semantics<parallel>], iteration_bounds = array<i64: 2, 1>, scalar_prefetch = 0 : i64, scratch_operands = 0 : i64, tpu.core_type = #tpu.core_type<tc>, window_params = [{transform_indices = @transform_0, window_bounds = array<i64: 1, 3, 256>}, {pipeline_mode = #tpu.pipeline_mode<synchronous>, transform_indices = @transform_1, window_bounds = array<i64: 64, 3>}, {pipeline_mode = #tpu.pipeline_mode<synchronous>, transform_indices = @transform_2, window_bounds = array<i64: 64, 1>}, {pipeline_mode = #tpu.pipeline_mode<synchronous>, transform_indices = @transform_3, window_bounds = array<i64: 3, 64>}, {pipeline_mode = #tpu.pipeline_mode<synchronous>, transform_indices = @transform_4, window_bounds = array<i64: 3, 1>}, {transform_indices = @transform_5, window_bounds = array<i64: 1, 3, 256>}]} {
    %c0 = arith.constant 0 : index
    %c0_0 = arith.constant 0 : index
    %c0_1 = arith.constant 0 : index
    %0 = vector.load %arg2[%c0, %c0_0, %c0_1] : memref<1x3x256xf32, #tpu.memory_space<vmem>>, vector<1x3x256xf32>
    %1 = vector.shape_cast %0 : vector<1x3x256xf32> to vector<3x256xf32>
    %c0_2 = arith.constant 0 : index
    %c0_3 = arith.constant 0 : index
    %2 = vector.load %arg3[%c0_2, %c0_3] : memref<64x3xf32, #tpu.memory_space<vmem>>, vector<64x3xf32>
    %cst = arith.constant dense<0.000000e+00> : vector<64x256xf32>
    %3 = tpu.matmul %2, %1, %cst {dimension_numbers = #tpu.dot_dimension_numbers<[1], [0], [0], [1], [0, 0, 1, 1], [], []>} : vector<64x3xf32>, vector<3x256xf32>, vector<64x256xf32> -> vector<64x256xf32>
    %c0_4 = arith.constant 0 : index
    %c0_5 = arith.constant 0 : index
    %4 = vector.load %arg4[%c0_4, %c0_5] : memref<64x1xf32, #tpu.memory_space<vmem>>, vector<64x1xf32>
    %5 = vector.broadcast %4 : vector<64x1xf32> to vector<64x256xf32>
    %6 = arith.addf %3, %5 : vector<64x256xf32>
    %cst_6 = arith.constant 0.000000e+00 : f32
    %7 = vector.broadcast %cst_6 : f32 to vector<64x256xf32>
    %8 = arith.cmpf oge, %6, %7 : vector<64x256xf32>
    %cst_7 = arith.constant 0.00999999977 : f32
    %9 = vector.broadcast %cst_7 : f32 to vector<64x256xf32>
    %10 = arith.mulf %9, %6 : vector<64x256xf32>
    %11 = arith.select %8, %6, %10 : vector<64x256xi1>, vector<64x256xf32>
    %c0_8 = arith.constant 0 : index
    %c0_9 = arith.constant 0 : index
    %12 = vector.load %arg5[%c0_8, %c0_9] : memref<3x64xf32, #tpu.memory_space<vmem>>, vector<3x64xf32>
    %cst_10 = arith.constant dense<0.000000e+00> : vector<3x256xf32>
    %13 = tpu.matmul %12, %11, %cst_10 {dimension_numbers = #tpu.dot_dimension_numbers<[1], [0], [0], [1], [0, 0, 1, 1], [], []>} : vector<3x64xf32>, vector<64x256xf32>, vector<3x256xf32> -> vector<3x256xf32>
    %c0_11 = arith.constant 0 : index
    %c0_12 = arith.constant 0 : index
    %14 = vector.load %arg6[%c0_11, %c0_12] : memref<3x1xf32, #tpu.memory_space<vmem>>, vector<3x1xf32>
    %15 = vector.broadcast %14 : vector<3x1xf32> to vector<3x256xf32>
    %16 = arith.addf %13, %15 : vector<3x256xf32>
    %c0_13 = arith.constant 0 : index
    %c0_14 = arith.constant 0 : index
    %c0_15 = arith.constant 0 : index
    %17 = vector.load %arg7[%c0_13, %c0_14, %c0_15] : memref<1x3x256xf32, #tpu.memory_space<vmem>>, vector<1x3x256xf32>
    %18 = vector.shape_cast %17 : vector<1x3x256xf32> to vector<3x256xf32>
    %19 = vector.shape_cast %16 : vector<3x256xf32> to vector<1x3x256xf32>
    tpu.vector_store %arg7[%c0_13, %c0_14, %c0_15], %19 {strides = array<i32>} : memref<1x3x256xf32, #tpu.memory_space<vmem>>, vector<1x3x256xf32>,
    return
  }
  func.func @transform_0(%arg0: i32, %arg1: i32) -> (i32, i32, i32) {
    %c0_i32 = arith.constant 0 : i32
    %c0_i32_0 = arith.constant 0 : i32
    return %arg0, %c0_i32, %arg1 : i32, i32, i32
  }
  func.func @transform_1(%arg0: i32, %arg1: i32) -> (i32, i32) {
    %c0_i32 = arith.constant 0 : i32
    %c0_i32_0 = arith.constant 0 : i32
    %c0_i32_1 = arith.constant 0 : i32
    return %c0_i32, %c0_i32_0 : i32, i32
  }
  func.func @transform_2(%arg0: i32, %arg1: i32) -> (i32, i32) {
    %c0_i32 = arith.constant 0 : i32
    %c0_i32_0 = arith.constant 0 : i32
    %c0_i32_1 = arith.constant 0 : i32
    return %c0_i32, %c0_i32_0 : i32, i32
  }
  func.func @transform_3(%arg0: i32, %arg1: i32) -> (i32, i32) {
    %c0_i32 = arith.constant 0 : i32
    %c0_i32_0 = arith.constant 0 : i32
    %c0_i32_1 = arith.constant 0 : i32
    return %c0_i32, %c0_i32_0 : i32, i32
  }
  func.func @transform_4(%arg0: i32, %arg1: i32) -> (i32, i32) {
    %c0_i32 = arith.constant 0 : i32
    %c0_i32_0 = arith.constant 0 : i32
    %c0_i32_1 = arith.constant 0 : i32
    return %c0_i32, %c0_i32_0 : i32, i32
  }
  func.func @transform_5(%arg0: i32, %arg1: i32) -> (i32, i32, i32) {
    %c0_i32 = arith.constant 0 : i32
    %c0_i32_0 = arith.constant 0 : i32
    return %arg0, %c0_i32, %arg1 : i32, i32, i32
  }
}

</mosaic_0001>

<bundles_post_ra>
// kernel: tpu_custom_call.1
= control target key start
LH: loop header
LB: loop body
LE: loop exit
PB: predicated region body
PF: predicated region fallthrough
CT: control target
= control target key end

     0   :  { %s813_s18 = smov 0   ;;  %s815_s19 = smov 0   ;;  %s915_s0 = inlined_call_operand.vmem [shape: f32[2,3,256], index: 0, kind: input, shape index: {}]   ;;  %s916_s1 = inlined_call_operand.vmem [shape: f32[64,3], index: 1, kind: input, shape index: {}]   ;;  %s917_s2 = inlined_call_operand.vmem [shape: f32[64,1], index: 2, kind: input, shape index: {}]   ;;  %s918_s3 = inlined_call_operand.vmem [shape: f32[3,64], index: 3, kind: input, shape index: {}]   ;;  %s919_s4 = inlined_call_operand.vmem [shape: f32[3,1], index: 4, kind: input, shape index: {}]   ;;  %s920_s5 = inlined_call_operand.vmem [shape: f32[2,3,256], index: 5, kind: output, shape index: {}]  }
   0x1   :  { %s817_s20 = smov 0  }
   0x2 LB: > { %s27_s21 = sadd.s32 1, %s775_s19  ;;  %p692_p0 = scmp.ge.s32.totalorder %s779_s20, 1  ;;  %s779_s20 = sphi %s817_s20, %s15_s20   ;;  %s775_s19 = sphi %s815_s19, %s922_s19   ;;  %s771_s18 = sphi %s813_s18, %s921_s18  }
   0x3   : > { %p29_p1 = scmp.ge.s32.totalorder %s27_s21, 2  ;;  %p208_p2 = scmp.lt.s32.totalorder %s779_s20, 3 }
   0x5   : > { %s924_s21 = smov (%p29_p1, %s27_s21), 0  ;;  %p209_p3 = pnand %p692_p0, %p208_p2 }
   0x6   : > { %p245_p4 = scmp.lt.s32.totalorder (!%p209_p3), %s771_s18, 1  ;;  %v781_v0 = vmov (!%p209_p3), 0.0   ;;  %v782_v1 = vmov (!%p209_p3), 0   ;;  %v273_v2 = vld [vmem:[%s917_s2] sm:$0xff] (!%p209_p3)  ;;  %v275_v3 = vld [vmem:[%s917_s2 + $0x10] sm:$0xff] (!%p209_p3)  ;;  %v274_v4 = vld [vmem:[%s917_s2 + $0x8] sm:$0xff] (!%p209_p3) }
   0x7   : > { %212 = sbr.rel (%p209_p3) target bundleno = 492 (0x1ec), region = 40  ;;  %417 = vmatprep.mubr.f32.mxu0 (!%p209_p3), %v781_v0  ;;  %589 = vmatprep.mubr.f32.mxu1 (!%p209_p3), %v781_v0  ;;  %v276_v5 = vld [vmem:[%s917_s2 + $0x18] sm:$0xff] (!%p209_p3)  ;;  %vm348_vm0 = vcmask (!%p209_p3), 1042432   ;;  %v265_v8 = vld [vmem:[%s916_s1] sm:$0xff] (!%p209_p3)  ;;  %vm323_vm1 = vcmask (!%p209_p3), 23552   ;;  %v278_v10 = vld [vmem:[%s917_s2 + $0x28] sm:$0xff] (!%p209_p3) }
   0x8   : > { %754 = vset.pattern.permute.xlu0 (!%p209_p3), %v782_v1  ;;  %755 = vset.pattern.permute.xlu1 (!%p209_p3), %v782_v1  ;;  %v277_v9 = vld [vmem:[%s917_s2 + $0x20] sm:$0xff] (!%p209_p3)  ;;  %v266_v11 = vld [vmem:[%s916_s1 + $0x8] sm:$0xff] (!%p209_p3)  ;;  %v279_v12 = vld [vmem:[%s917_s2 + $0x30] sm:$0xff] (!%p209_p3) }
   0x9   : > { %283 = vperm.xlu0 (!%p209_p3), %754, %v273_v2   ;;  %293 = vperm.xlu1 (!%p209_p3), %755, %v275_v3   ;;  %v280_v13 = vld [vmem:[%s917_s2 + $0x38] sm:$0xff] (!%p209_p3)  ;;  %v267_v14 = vld [vmem:[%s916_s1 + $0x10] sm:$0xff] (!%p209_p3)  ;;  %v515_v15 = vld [vmem:[%s919_s4] sm:$0x7] (!%p209_p3) }
   0xa   : > { %v268_v16 = vld [vmem:[%s916_s1 + $0x18] sm:$0xff] (!%p209_p3)  ;;  %v269_v17 = vld [vmem:[%s916_s1 + $0x20] sm:$0xff] (!%p209_p3)  ;;  %v270_v18 = vld [vmem:[%s916_s1 + $0x28] sm:$0xff] (!%p209_p3) }
   0xb   : > { %v271_v19 = vld [vmem:[%s916_s1 + $0x30] sm:$0xff] (!%p209_p3)  ;;  %v272_v20 = vld [vmem:[%s916_s1 + $0x38] sm:$0xff] (!%p209_p3) }
   0xd   : > { %288 = vperm.xlu0 (!%p209_p3), %754, %v274_v4   ;;  %298 = vperm.xlu1 (!%p209_p3), %755, %v276_v5  }
   0xe   : > { %s926_s18 = smov (!%p245_p4, %s771_s18), 1 }
   0xf   : > { %s710_s26 = sshll.u32 %s926_s18, 3 }
  0x10   : > { %s252_s29 = scalar_lea.vmem %s915_s0, %s710_s26  ;;  %s262_s23 = scalar_lea.vmem %s920_s5, %s710_s26 }
  0x11   : > { %v264_v6 = vld [vmem:[%s252_s29] sm:$0x77]  ;;  %303 = vperm.xlu0 %754, %v277_v9   ;;  %308 = vperm.xlu1 %755, %v278_v10  }
  0x12   : > { %v322_v7 = vcombine.high %v264_v6, %v264_v6 }
  0x14   : > { %697 = vmatprep.subr.msk.mxu0 %vm348_vm0, %v322_v7 }
  0x15   : > { %698 = vmatpush1.msk.msra.mxu0 %vm348_vm0, %v264_v6  ;;  %313 = vperm.xlu0 %754, %v279_v12  }
  0x16   : > { %699 = vmatmul.mubr.msk.f32.vlgmr.msra.gmra.mrb[0].mxu0 %vm323_vm1, %v265_v8  ;;  %318 = vperm.xlu1 %755, %v280_v13  }
  0x17   : > { %423 = vmatprep.mubr.f32.mxu0 %v781_v0 }
  0x19   : > { %518 = vperm.xlu0 %754, %v515_v15  }
  0x1a   : > { %700 = vmatmul.mubr.msk.f32.gmra.mrb[2].mxu0 %vm323_vm1, %v266_v11 }
  0x1b   : > { %429 = vmatprep.mubr.f32.mxu0 %v781_v0 }
  0x1e   : > { %701 = vmatmul.mubr.msk.f32.gmra.mrb[4].mxu0 %vm323_vm1, %v267_v14 }
  0x1f   : > { %435 = vmatprep.mubr.f32.mxu0 %v781_v0 }
  0x22   : > { %702 = vmatmul.mubr.msk.f32.gmra.mrb[6].mxu0 %vm323_vm1, %v268_v16 }
  0x23   : > { %441 = vmatprep.mubr.f32.mxu0 %v781_v0 }
  0x26   : > { %703 = vmatmul.mubr.msk.f32.gmra.mrb[8].mxu0 %vm323_vm1, %v269_v17 }
  0x27   : > { %447 = vmatprep.mubr.f32.mxu0 %v781_v0 }
  0x2a   : > { %704 = vmatmul.mubr.msk.f32.gmra.mrb[10].mxu0 %vm323_vm1, %v270_v18 }
  0x2b   : > { %453 = vmatprep.mubr.f32.mxu0 %v781_v0 }
  0x2e   : > { %705 = vmatmul.mubr.msk.f32.gmra.mrb[12].mxu0 %vm323_vm1, %v271_v19 }
  0x2f   : > { %459 = vmatprep.mubr.f32.mxu0 %v781_v0 }
  0x32   : > { %706 = vmatmul.mubr.msk.f32.gmra.mrb[14].mxu0 %vm323_vm1, %v272_v20 }
  0x88   : > { %v284_v21 = vpop.permute.xlu0 %283  ;;  %v294_v32 = vpop.permute.xlu1 %293 }
  0x8c   : > { %v289_v26 = vpop.permute.xlu0 %288  ;;  %v299_v46 = vpop.permute.xlu1 %298 }
  0x90   : > { %v304_v54 = vpop.permute.xlu0 %303  ;;  %v309_v2 = vpop.permute.xlu1 %308 }
  0x94   : > { %v314_v10 = vpop.permute.xlu0 %313 }
  0xe9   : > { %v419_v22 = vpop.f32.mrb[0].mxu0 }
  0xea   : > { %v420_v23 = vadd.f32 %v419_v22, %v284_v21  ;;  %v421_v24 = vpop.f32.mrb[1].mxu0  ;;  %v319_v22 = vpop.permute.xlu1 %318 }
  0xeb   : > { %v422_v25 = vadd.f32 %v421_v24, %v284_v21 }
  0xec   : > { %v482_v28 = vmul.f32 0.01, %v420_v23  ;;  %vm466_vm2 = vcmp.ge.f32.partialorder %v420_v23, 0.0 }
  0xed   : > { %v425_v27 = vpop.f32.mrb[2].mxu0  ;;  %v483_v31 = vmul.f32 0.01, %v422_v25  ;;  %vm467_vm3 = vcmp.ge.f32.partialorder %v422_v25, 0.0 }
  0xee   : > { %v426_v29 = vadd.f32 %v425_v27, %v289_v26  ;;  %v427_v30 = vpop.f32.mrb[3].mxu0  ;;  %v498_v39 = vsel %vm466_vm2, %v420_v23, %v482_v28  ;;  %vm521_vm2 = vcmask 523264  }
  0xef   : > { %v428_v33 = vadd.f32 %v427_v30, %v289_v26  ;;  %v499_v42 = vsel %vm467_vm3, %v422_v25, %v483_v31 }
  0xf0   : > { %v484_v34 = vmul.f32 0.01, %v426_v29  ;;  %vm468_vm4 = vcmp.ge.f32.partialorder %v426_v29, 0.0 }
  0xf1   : > { %v485_v35 = vmul.f32 0.01, %v428_v33  ;;  %v431_v36 = vpop.f32.mrb[4].mxu0  ;;  %vm469_vm5 = vcmp.ge.f32.partialorder %v428_v33, 0.0 }
  0xf2   : > { %v432_v37 = vadd.f32 %v431_v36, %v294_v32  ;;  %v433_v38 = vpop.f32.mrb[5].mxu0  ;;  %v500_v40 = vsel %vm468_vm4, %v426_v29, %v484_v34 }
  0xf3   : > { %v434_v41 = vadd.f32 %v433_v38, %v294_v32  ;;  %v501_v43 = vsel %vm469_vm5, %v428_v33, %v485_v35  ;;  %v714_v44 = vpack.c.bf16 %v500_v40, %v498_v39  ;;  %v519_v38 = vpop.permute.xlu0 %518 }
  0xf4   : > { %v712_v45 = vpack.c.bf16 %v501_v43, %v499_v42  ;;  %v486_v48 = vmul.f32 0.01, %v432_v37  ;;  %vm470_vm6 = vcmp.ge.f32.partialorder %v432_v37, 0.0 }
  0xf5   : > { %v437_v47 = vpop.f32.mrb[6].mxu0  ;;  %v487_v51 = vmul.f32 0.01, %v434_v41  ;;  %vm471_vm7 = vcmp.ge.f32.partialorder %v434_v41, 0.0 }
  0xf6   : > { %v438_v49 = vadd.f32 %v437_v47, %v299_v46  ;;  %v439_v50 = vpop.f32.mrb[7].mxu0  ;;  %713 = vmatprep.subr.bf16.mxu1 %v712_v45  ;;  %v502_v59 = vsel %vm470_vm6, %v432_v37, %v486_v48  ;;  %v514_v37 = vld [vmem:[%s918_s3] sm:$0x7] }
  0xf7   : > { %v440_v52 = vadd.f32 %v439_v50, %v299_v46  ;;  %715 = vmatpush1.bf16.msra.mxu1 %v714_v44  ;;  %v503_v62 = vsel %vm471_vm7, %v434_v41, %v487_v51 }
  0xf8   : > { %vm472_vm8 = vcmp.ge.f32.partialorder %v438_v49, 0.0  ;;  %v488_v53 = vmul.f32 0.01, %v438_v49 }
  0xf9   : > { %vm473_vm9 = vcmp.ge.f32.partialorder %v440_v52, 0.0  ;;  %v489_v55 = vmul.f32 0.01, %v440_v52  ;;  %v443_v56 = vpop.f32.mrb[8].mxu0 }
  0xfa   : > { %v444_v57 = vadd.f32 %v443_v56, %v304_v54  ;;  %v445_v58 = vpop.f32.mrb[9].mxu0  ;;  %v504_v60 = vsel %vm472_vm8, %v438_v49, %v488_v53 }
  0xfb   : > { %v446_v61 = vadd.f32 %v445_v58, %v304_v54  ;;  %v505_v63 = vsel %vm473_vm9, %v440_v52, %v489_v55  ;;  %v718_v0 = vpack.c.bf16 %v504_v60, %v502_v59 }
  0xfc   : > { %v716_v1 = vpack.c.bf16 %v505_v63, %v503_v62  ;;  %v490_v4 = vmul.f32 0.01, %v444_v57  ;;  %vm474_vm10 = vcmp.ge.f32.partialorder %v444_v57, 0.0 }
  0xfd   : > { %v449_v3 = vpop.f32.mrb[10].mxu0  ;;  %v491_v7 = vmul.f32 0.01, %v446_v61  ;;  %vm475_vm11 = vcmp.ge.f32.partialorder %v446_v61, 0.0 }
  0xfe   : > { %v450_v5 = vadd.f32 %v449_v3, %v309_v2  ;;  %v451_v6 = vpop.f32.mrb[11].mxu0  ;;  %717 = vmatprep.subr.bf16.mxu1 %v716_v1  ;;  %v506_v15 = vsel %vm474_vm10, %v444_v57, %v490_v4 }
  0xff   : > { %v452_v8 = vadd.f32 %v451_v6, %v309_v2  ;;  %719 = vmatpush1.bf16.msra.mxu1 %v718_v0  ;;  %v507_v18 = vsel %vm475_vm11, %v446_v61, %v491_v7 }
 0x100   : > { %vm476_vm12 = vcmp.ge.f32.partialorder %v450_v5, 0.0  ;;  %v492_v9 = vmul.f32 0.01, %v450_v5 }
 0x101   : > { %vm477_vm13 = vcmp.ge.f32.partialorder %v452_v8, 0.0  ;;  %v493_v11 = vmul.f32 0.01, %v452_v8  ;;  %v455_v12 = vpop.f32.mrb[12].mxu0 }
 0x102   : > { %v456_v13 = vadd.f32 %v455_v12, %v314_v10  ;;  %v457_v14 = vpop.f32.mrb[13].mxu0  ;;  %v508_v16 = vsel %vm476_vm12, %v450_v5, %v492_v9 }
 0x103   : > { %v458_v17 = vadd.f32 %v457_v14, %v314_v10  ;;  %v509_v19 = vsel %vm477_vm13, %v452_v8, %v493_v11  ;;  %v722_v20 = vpack.c.bf16 %v508_v16, %v506_v15 }
 0x104   : > { %v720_v21 = vpack.c.bf16 %v509_v19, %v507_v18  ;;  %v494_v24 = vmul.f32 0.01, %v456_v13  ;;  %vm478_vm14 = vcmp.ge.f32.partialorder %v456_v13, 0.0 }
 0x105   : > { %v461_v23 = vpop.f32.mrb[14].mxu0  ;;  %v495_v27 = vmul.f32 0.01, %v458_v17  ;;  %vm479_vm15 = vcmp.ge.f32.partialorder %v458_v17, 0.0 }
 0x106   : > { %v462_v25 = vadd.f32 %v461_v23, %v319_v22  ;;  %v463_v26 = vpop.f32.mrb[15].mxu0  ;;  %721 = vmatprep.subr.bf16.mxu1 %v720_v21  ;;  %v510_v31 = vsel %vm478_vm14, %v456_v13, %v494_v24 }
 0x107   : > { %v464_v28 = vadd.f32 %v463_v26, %v319_v22  ;;  %723 = vmatpush1.bf16.msra.mxu1 %v722_v20  ;;  %v511_v33 = vsel %vm479_vm15, %v458_v17, %v495_v27 }
 0x108   : > { %vm480_vm0 = vcmp.ge.f32.partialorder %v462_v25, 0.0  ;;  %v496_v29 = vmul.f32 0.01, %v462_v25 }
 0x109   : > { %vm481_vm1 = vcmp.ge.f32.partialorder %v464_v28, 0.0  ;;  %v497_v30 = vmul.f32 0.01, %v464_v28 }
 0x10a   : > { %v512_v32 = vsel %vm480_vm0, %v462_v25, %v496_v29 }
 0x10b   : > { %v513_v34 = vsel %vm481_vm1, %v464_v28, %v497_v30  ;;  %v726_v35 = vpack.c.bf16 %v512_v32, %v510_v31 }
 0x10c   : > { %v724_v36 = vpack.c.bf16 %v513_v34, %v511_v33 }
 0x10e   : > { %725 = vmatprep.subr.bf16.mxu1 %v724_v36 }
 0x10f   : > { %727 = vmatpush1.bf16.msra.mxu1 %v726_v35 }
 0x112   : > { %707 = vmatmul.mubr.msk.f32.vlgmr.msra.gmra.mrb[0].mxu1 %vm521_vm2, %v514_v37 }
 0x1e5   : > { %v591_v39 = vpop.f32.mrb[0].mxu1 }
 0x1e6   : > { %v592_v40 = vadd.f32 %v591_v39, %v519_v38  ;;  %v593_v41 = vpop.f32.mrb[1].mxu1 }
 0x1e7   : > { %v594_v42 = vadd.f32 %v593_v41, %v519_v38 }
 0x1e9   : > { %v598_v43 = vcombine.low %v592_v40, %v594_v42 }
 0x1eb   : > { %600 = vst [vmem:[%s262_s23] sm:$0x77] %v598_v43 }
 0x1ec PF: > { %s15_s20 = sadd.s32 1, %s779_s20   ;;  %s921_s18 = smov %s775_s19 }
 0x1ed   : > { %p12_p5 = scmp.ge.s32.totalorder %s15_s20, 4   ;;  %s922_s19 = smov %s924_s21 }
 0x1ef   :  { %14 = sbr.rel (!%p12_p5) target bundleno = 2 (0x2), region = 70 }

</bundles_post_ra>
